<compile_context>
chip_gen: v6e
topology: v6e:2x2x1
jax: 0.10.0
libtpu: 0.0.40
codegen_flags: <defaults>
</compile_context>

<pallas_src>
import math
from functools import partial

import jax
import jax.numpy as jnp
from jax import lax
from jax.experimental import pallas as pl
from jax.experimental.pallas import tpu as pltpu

# ----------------------------- model config ---------------------------------
N_HEAD = 4
N_EMBD = 32
SEQ = 8
BATCH = 2
D_HEAD = N_EMBD // N_HEAD
LN_EPS = 1e-5

# Packed-weight column offsets (all 128-lane aligned so every static slice
# starts on a lane-tile boundary).  Layout assumes 3*D <= 128 and 4*D <= 128.
OFF_QKV = 0            # w_in   (D, 3D)
OFF_OUT = 128          # w_out  (D, D)
OFF_W1 = 256           # w1     (D, 4D)
OFF_W2T = 384          # w2^T   (D, 4D)
WMAT_COLS = 512


# ------------------------------- kernel -------------------------------------
def clip_layer_kernel(x_ref, w_ref, v_ref, o_ref, *, n_head):
    x = x_ref[...]                                 # (S, D) fp32, one batch elem
    S, D = x.shape
    H = n_head
    dh = D // H

    # --- packed parameter views (static slices of two DMA'd buffers) ---
    ln1_g = v_ref[0:1, :D]
    ln1_b = v_ref[1:2, :D]
    ln2_g = v_ref[2:3, :D]
    ln2_b = v_ref[3:4, :D]
    b_out = v_ref[4:5, :D]
    b2 = v_ref[5:6, :D]
    b_in = v_ref[6:7, :3 * D]
    b1 = v_ref[7:8, :4 * D]

    w_qkv = w_ref[:, OFF_QKV:OFF_QKV + 3 * D]      # (D, 3D)
    w1 = w_ref[:, OFF_W1:OFF_W1 + 4 * D]           # (D, 4D)
    w2t = w_ref[:, OFF_W2T:OFF_W2T + 4 * D]        # (D, 4D) == w2.T

    # ---- LayerNorm 1 ----
    mu = jnp.mean(x, axis=-1, keepdims=True)
    var = jnp.mean((x - mu) ** 2, axis=-1, keepdims=True)
    h = (x - mu) * lax.rsqrt(var + LN_EPS) * ln1_g + ln1_b

    # ---- Self attention (causal) ----
    qkv = jnp.dot(h, w_qkv, preferred_element_type=jnp.float32) + b_in  # (S, 3D)

    # In-kernel causal mask (two VPU iota compares; no HBM transfer).
    row = lax.broadcasted_iota(jnp.int32, (S, S), 0)
    col = lax.broadcasted_iota(jnp.int32, (S, S), 1)
    causal = col <= row
    neg_big = jnp.float32(-1e30)                   # finite -> NaN-robust

    inv_sqrt_dh = 1.0 / math.sqrt(dh)

    attn = jnp.zeros((S, D), jnp.float32)
    for hh in range(H):                            # tiny static unroll, H = 4
        qh = qkv[:, hh * dh:(hh + 1) * dh] * inv_sqrt_dh
        kh = qkv[:, D + hh * dh:D + (hh + 1) * dh]
        vh = qkv[:, 2 * D + hh * dh:2 * D + (hh + 1) * dh]

        s = lax.dot_general(qh, kh, (((1,), (1,)), ((), ())),
                            preferred_element_type=jnp.float32)          # (S, S)
        s = jnp.where(causal, s, neg_big)
        m = jnp.max(s, axis=-1, keepdims=True)
        p = jnp.exp(s - m)
        p = p / jnp.sum(p, axis=-1, keepdims=True)                        # exact softmax
        oh = jnp.dot(p, vh, preferred_element_type=jnp.float32)           # (S, dh)

        # Fused out-projection + head sum: concat(heads) @ W_out
        w_out_h = w_ref[hh * dh:(hh + 1) * dh, OFF_OUT:OFF_OUT + D]       # (dh, D)
        attn = attn + jnp.dot(oh, w_out_h,
                              preferred_element_type=jnp.float32)         # (S, D)

    x = x + attn + b_out                           # residual 1

    # ---- LayerNorm 2 ----
    mu2 = jnp.mean(x, axis=-1, keepdims=True)
    var2 = jnp.mean((x - mu2) ** 2, axis=-1, keepdims=True)
    h2 = (x - mu2) * lax.rsqrt(var2 + LN_EPS) * ln2_g + ln2_b

    # ---- MLP with QuickGELU: y = y * sigmoid(1.702 * y) ----
    f = jnp.dot(h2, w1, preferred_element_type=jnp.float32) + b1          # (S, 4D)
    f = f * jax.nn.sigmoid(1.702 * f)
    f = lax.dot_general(f, w2t, (((1,), (1,)), ((), ())),
                        preferred_element_type=jnp.float32) + b2          # (S, D)

    o_ref[...] = x + f                             # residual 2


# ------------------------------ wrapper --------------------------------------
def pack_params(params):
    """Pack 12 small parameter tensors into one weight slab + one vector slab."""
    (ln1_g, ln1_b, w_in, b_in, w_out, b_out,
     ln2_g, ln2_b, w1, b1, w2, b2) = params
    D = w_in.shape[0]
    assert 3 * D <= 128 and 4 * D <= 128, "packing layout assumes n_embd <= 32"

    vec = jnp.zeros((8, 4 * D), jnp.float32)       # (8, 128) -> exactly one vreg tile
    vec = vec.at[0, :D].set(ln1_g.reshape(-1))
    vec = vec.at[1, :D].set(ln1_b.reshape(-1))
    vec = vec.at[2, :D].set(ln2_g.reshape(-1))
    vec = vec.at[3, :D].set(ln2_b.reshape(-1))
    vec = vec.at[4, :D].set(b_out.reshape(-1))
    vec = vec.at[5, :D].set(b2.reshape(-1))
    vec = vec.at[6, :3 * D].set(b_in.reshape(-1))
    vec = vec.at[7, :4 * D].set(b1.reshape(-1))

    wmat = jnp.zeros((D, WMAT_COLS), jnp.float32)  # (32, 512), lane-aligned fields
    wmat = wmat.at[:, OFF_QKV:OFF_QKV + 3 * D].set(w_in)
    wmat = wmat.at[:, OFF_OUT:OFF_OUT + D].set(w_out)
    wmat = wmat.at[:, OFF_W1:OFF_W1 + 4 * D].set(w1)
    wmat = wmat.at[:, OFF_W2T:OFF_W2T + 4 * D].set(w2.T)
    return wmat, vec


def clip_layer(x, params):
    B, S, D = x.shape
    H = N_HEAD
    wmat, vec = pack_params(params)

    out = pl.pallas_call(
        partial(clip_layer_kernel, n_head=H),
        out_shape=jax.ShapeDtypeStruct((B, S, D), jnp.float32),
        grid_spec=pltpu.PrefetchScalarGridSpec(
            num_scalar_prefetch=0,
            grid=(B,),                                               # batch on the grid
            in_specs=[
                pl.BlockSpec((None, S, D), lambda b: (b, 0, 0)),     # x: one batch / step
                pl.BlockSpec((D, WMAT_COLS), lambda b: (0, 0)),      # weights, resident
                pl.BlockSpec((8, 4 * D), lambda b: (0, 0)),          # vectors, resident
            ],
            out_specs=pl.BlockSpec((None, S, D), lambda b: (b, 0, 0)),
        ),
        compiler_params=pltpu.CompilerParams(
            dimension_semantics=("parallel",)),      # shards across 2 TCs on v7x
    )(x, wmat, vec)
    return out


# --------------------------- pure-JAX reference ------------------------------
def clip_layer_ref(x, params):
    (ln1_g, ln1_b, w_in, b_in, w_out, b_out,
     ln2_g, ln2_b, w1, b1, w2, b2) = params
    B, S, D = x.shape
    H, dh = N_HEAD, D_HEAD

    def ln(v, g, b):
        mu = jnp.mean(v, axis=-1, keepdims=True)
        var = jnp.mean((v - mu) ** 2, axis=-1, keepdims=True)
        return (v - mu) * lax.rsqrt(var + LN_EPS) * g + b

    res = x
    h = ln(x, ln1_g, ln1_b)
    qkv = h @ w_in + b_in
    q, k, v = jnp.split(qkv, 3, axis=-1)
    q = q.reshape(B, S, H, dh).transpose(0, 2, 1, 3)
    k = k.reshape(B, S, H, dh).transpose(0, 2, 1, 3)
    v = v.reshape(B, S, H, dh).transpose(0, 2, 1, 3)
    s = jnp.einsum('bhqd,bhkd->bhqk', q, k)
    mask = jnp.triu(jnp.ones((S, S), bool), 1)
    s = jnp.where(mask, -jnp.inf, s) / math.sqrt(dh)
    p = jax.nn.softmax(s, axis=-1)
    o = jnp.einsum('bhqk,bhkd->bhqd', p, v).transpose(0, 2, 1, 3).reshape(B, S, D)
    x = o @ w_out + b_out + res
    res = x
    h = ln(x, ln2_g, ln2_b)
    f = h @ w1 + b1
    f = f * jax.nn.sigmoid(1.702 * f)
    f = f @ w2 + b2
    return f + res


# --------------------------------- main ---------------------------------------
if __name__ == "__main__":
    key = jax.random.PRNGKey(0)
    ks = jax.random.split(key, 13)
    D = N_EMBD

    # Deterministic synthetic parameters (shapes follow the module's __init__).
    params = (
        1.0 + 0.1 * jax.random.normal(ks[0], (1, D), jnp.float32),   # ln1 gamma
        0.1 * jax.random.normal(ks[1], (1, D), jnp.float32),         # ln1 beta
        0.05 * jax.random.normal(ks[2], (D, 3 * D), jnp.float32),    # in_proj W (in, out)
        0.05 * jax.random.normal(ks[3], (1, 3 * D), jnp.float32),    # in_proj b
        0.05 * jax.random.normal(ks[4], (D, D), jnp.float32),        # out_proj W
        0.05 * jax.random.normal(ks[5], (1, D), jnp.float32),        # out_proj b
        1.0 + 0.1 * jax.random.normal(ks[6], (1, D), jnp.float32),   # ln2 gamma
        0.1 * jax.random.normal(ks[7], (1, D), jnp.float32),         # ln2 beta
        0.05 * jax.random.normal(ks[8], (D, 4 * D), jnp.float32),    # linear_1 W
        0.05 * jax.random.normal(ks[9], (1, 4 * D), jnp.float32),    # linear_1 b
        0.05 * jax.random.normal(ks[10], (4 * D, D), jnp.float32),   # linear_2 W
        0.05 * jax.random.normal(ks[11], (1, D), jnp.float32),       # linear_2 b
    )

    x = jax.random.normal(ks[12], (BATCH, SEQ, N_EMBD), jnp.float32)

    out = clip_layer(x, params)
    out = jax.block_until_ready(out)

    ref = clip_layer_ref(x, params)
    assert out.shape == (BATCH, SEQ, N_EMBD)
    assert jnp.allclose(out, ref, rtol=1e-4, atol=1e-4), \
        f"max err {jnp.max(jnp.abs(out - ref))}"

    print("KERNEL_OK")
</pallas_src>

<mosaic_0001>
module attributes {stable_mosaic.version = 11 : i64} {
  func.func @clip_layer_kernel(%arg0: i32, %arg1: memref<1x8x32xf32, #tpu.memory_space<vmem>>, %arg2: memref<32x512xf32, #tpu.memory_space<vmem>>, %arg3: memref<8x128xf32, #tpu.memory_space<vmem>>, %arg4: memref<1x8x32xf32, #tpu.memory_space<vmem>>) attributes {dimension_semantics = [#tpu.dimension_semantics<parallel>], iteration_bounds = array<i64: 2>, scalar_prefetch = 0 : i64, scratch_operands = 0 : i64, tpu.core_type = #tpu.core_type<tc>, window_params = [{transform_indices = @transform_0, window_bounds = array<i64: 1, 8, 32>}, {pipeline_mode = #tpu.pipeline_mode<synchronous>, transform_indices = @transform_1, window_bounds = array<i64: 32, 512>}, {pipeline_mode = #tpu.pipeline_mode<synchronous>, transform_indices = @transform_2, window_bounds = array<i64: 8, 128>}, {transform_indices = @transform_3, window_bounds = array<i64: 1, 8, 32>}]} {
    %c0 = arith.constant 0 : index
    %c0_0 = arith.constant 0 : index
    %c0_1 = arith.constant 0 : index
    %0 = vector.load %arg1[%c0, %c0_0, %c0_1] : memref<1x8x32xf32, #tpu.memory_space<vmem>>, vector<1x8x32xf32>
    %1 = vector.shape_cast %0 : vector<1x8x32xf32> to vector<8x32xf32>
    %c0_2 = arith.constant 0 : index
    %c0_3 = arith.constant 0 : index
    %2 = vector.load %arg3[%c0_2, %c0_3] : memref<8x128xf32, #tpu.memory_space<vmem>>, vector<1x32xf32>
    %c1 = arith.constant 1 : index
    %c0_4 = arith.constant 0 : index
    %3 = vector.load %arg3[%c1, %c0_4] : memref<8x128xf32, #tpu.memory_space<vmem>>, vector<1x32xf32>
    %c2 = arith.constant 2 : index
    %c0_5 = arith.constant 0 : index
    %4 = vector.load %arg3[%c2, %c0_5] : memref<8x128xf32, #tpu.memory_space<vmem>>, vector<1x32xf32>
    %c3 = arith.constant 3 : index
    %c0_6 = arith.constant 0 : index
    %5 = vector.load %arg3[%c3, %c0_6] : memref<8x128xf32, #tpu.memory_space<vmem>>, vector<1x32xf32>
    %c4 = arith.constant 4 : index
    %c0_7 = arith.constant 0 : index
    %6 = vector.load %arg3[%c4, %c0_7] : memref<8x128xf32, #tpu.memory_space<vmem>>, vector<1x32xf32>
    %c5 = arith.constant 5 : index
    %c0_8 = arith.constant 0 : index
    %7 = vector.load %arg3[%c5, %c0_8] : memref<8x128xf32, #tpu.memory_space<vmem>>, vector<1x32xf32>
    %c6 = arith.constant 6 : index
    %c0_9 = arith.constant 0 : index
    %8 = vector.load %arg3[%c6, %c0_9] : memref<8x128xf32, #tpu.memory_space<vmem>>, vector<1x96xf32>
    %c7 = arith.constant 7 : index
    %c0_10 = arith.constant 0 : index
    %9 = vector.load %arg3[%c7, %c0_10] : memref<8x128xf32, #tpu.memory_space<vmem>>, vector<1x128xf32>
    %c0_11 = arith.constant 0 : index
    %c0_12 = arith.constant 0 : index
    %10 = vector.load %arg2[%c0_11, %c0_12] : memref<32x512xf32, #tpu.memory_space<vmem>>, vector<32x96xf32>
    %c0_13 = arith.constant 0 : index
    %c256 = arith.constant 256 : index
    %11 = vector.load %arg2[%c0_13, %c256] : memref<32x512xf32, #tpu.memory_space<vmem>>, vector<32x128xf32>
    %c0_14 = arith.constant 0 : index
    %c384 = arith.constant 384 : index
    %12 = vector.load %arg2[%c0_14, %c384] : memref<32x512xf32, #tpu.memory_space<vmem>>, vector<32x128xf32>
    %cst = arith.constant dense<0.000000e+00> : vector<8xf32>
    %13 = vector.multi_reduction <add>, %1, %cst [1] : vector<8x32xf32> to vector<8xf32>
    %14 = vector.shape_cast %13 : vector<8xf32> to vector<8x1xf32>
    %cst_15 = arith.constant 3.200000e+01 : f32
    %15 = vector.broadcast %cst_15 : f32 to vector<8x1xf32>
    %16 = arith.divf %14, %15 : vector<8x1xf32>
    %17 = vector.broadcast %16 : vector<8x1xf32> to vector<8x32xf32>
    %18 = arith.subf %1, %17 : vector<8x32xf32>
    %19 = arith.mulf %18, %18 : vector<8x32xf32>
    %cst_16 = arith.constant dense<0.000000e+00> : vector<8xf32>
    %20 = vector.multi_reduction <add>, %19, %cst_16 [1] : vector<8x32xf32> to vector<8xf32>
    %21 = vector.shape_cast %20 : vector<8xf32> to vector<8x1xf32>
    %cst_17 = arith.constant 3.200000e+01 : f32
    %22 = vector.broadcast %cst_17 : f32 to vector<8x1xf32>
    %23 = arith.divf %21, %22 : vector<8x1xf32>
    %24 = vector.broadcast %16 : vector<8x1xf32> to vector<8x32xf32>
    %25 = arith.subf %1, %24 : vector<8x32xf32>
    %cst_18 = arith.constant 9.99999974E-6 : f32
    %26 = vector.broadcast %cst_18 : f32 to vector<8x1xf32>
    %27 = arith.addf %23, %26 : vector<8x1xf32>
    %28 = math.rsqrt %27 : vector<8x1xf32>
    %29 = vector.broadcast %28 : vector<8x1xf32> to vector<8x32xf32>
    %30 = arith.mulf %25, %29 : vector<8x32xf32>
    %31 = vector.broadcast %2 : vector<1x32xf32> to vector<8x32xf32>
    %32 = arith.mulf %30, %31 : vector<8x32xf32>
    %33 = vector.broadcast %3 : vector<1x32xf32> to vector<8x32xf32>
    %34 = arith.addf %32, %33 : vector<8x32xf32>
    %cst_19 = arith.constant dense<0.000000e+00> : vector<8x96xf32>
    %35 = tpu.matmul %34, %10, %cst_19 {dimension_numbers = #tpu.dot_dimension_numbers<[1], [0], [0], [1], [0, 0, 1, 1], [], []>} : vector<8x32xf32>, vector<32x96xf32>, vector<8x96xf32> -> vector<8x96xf32>
    %36 = vector.broadcast %8 : vector<1x96xf32> to vector<8x96xf32>
    %37 = arith.addf %35, %36 : vector<8x96xf32>
    %38 = tpu.iota {dimensions = array<i32: 0>} : vector<8x8xi32>
    %39 = tpu.iota {dimensions = array<i32: 1>} : vector<8x8xi32>
    %40 = arith.cmpi sle, %39, %38 : vector<8x8xi32>
    %cst_20 = arith.constant 0.000000e+00 : f32
    %41 = vector.broadcast %cst_20 : f32 to vector<8x32xf32>
    %42 = vector.extract_strided_slice %37 {offsets = [0, 0], sizes = [8, 8], strides = [1, 1]} : vector<8x96xf32> to vector<8x8xf32>
    %cst_21 = arith.constant 0.353553385 : f32
    %43 = vector.broadcast %cst_21 : f32 to vector<8x8xf32>
    %44 = arith.mulf %42, %43 : vector<8x8xf32>
    %45 = vector.extract_strided_slice %37 {offsets = [0, 32], sizes = [8, 8], strides = [1, 1]} : vector<8x96xf32> to vector<8x8xf32>
    %46 = vector.extract_strided_slice %37 {offsets = [0, 64], sizes = [8, 8], strides = [1, 1]} : vector<8x96xf32> to vector<8x8xf32>
    %cst_22 = arith.constant dense<0.000000e+00> : vector<8x8xf32>
    %47 = tpu.matmul %44, %45, %cst_22 {dimension_numbers = #tpu.dot_dimension_numbers<[1], [1], [0], [0], [0, 0, 1, 0], [], []>} : vector<8x8xf32>, vector<8x8xf32>, vector<8x8xf32> -> vector<8x8xf32>
    %cst_23 = arith.constant -1.000000e+30 : f32
    %48 = vector.broadcast %cst_23 : f32 to vector<8x8xf32>
    %49 = arith.select %40, %47, %48 : vector<8x8xi1>, vector<8x8xf32>
    %cst_24 = arith.constant dense<0xFF800000> : vector<8xf32>
    %50 = vector.multi_reduction <maximumf>, %49, %cst_24 [1] : vector<8x8xf32> to vector<8xf32>
    %51 = vector.shape_cast %50 : vector<8xf32> to vector<8x1xf32>
    %52 = vector.broadcast %51 : vector<8x1xf32> to vector<8x8xf32>
    %53 = arith.subf %49, %52 : vector<8x8xf32>
    %54 = math.exp %53 : vector<8x8xf32>
    %cst_25 = arith.constant dense<0.000000e+00> : vector<8xf32>
    %55 = vector.multi_reduction <add>, %54, %cst_25 [1] : vector<8x8xf32> to vector<8xf32>
    %56 = vector.shape_cast %55 : vector<8xf32> to vector<8x1xf32>
    %57 = vector.broadcast %56 : vector<8x1xf32> to vector<8x8xf32>
    %58 = arith.divf %54, %57 : vector<8x8xf32>
    %cst_26 = arith.constant dense<0.000000e+00> : vector<8x8xf32>
    %59 = tpu.matmul %58, %46, %cst_26 {dimension_numbers = #tpu.dot_dimension_numbers<[1], [0], [0], [1], [0, 0, 1, 1], [], []>} : vector<8x8xf32>, vector<8x8xf32>, vector<8x8xf32> -> vector<8x8xf32>
    %c0_27 = arith.constant 0 : index
    %c128 = arith.constant 128 : index
    %60 = vector.load %arg2[%c0_27, %c128] : memref<32x512xf32, #tpu.memory_space<vmem>>, vector<8x32xf32>
    %cst_28 = arith.constant dense<0.000000e+00> : vector<8x32xf32>
    %61 = tpu.matmul %59, %60, %cst_28 {dimension_numbers = #tpu.dot_dimension_numbers<[1], [0], [0], [1], [0, 0, 1, 1], [], []>} : vector<8x8xf32>, vector<8x32xf32>, vector<8x32xf32> -> vector<8x32xf32>
    %62 = arith.addf %41, %61 : vector<8x32xf32>
    %63 = vector.extract_strided_slice %37 {offsets = [0, 8], sizes = [8, 8], strides = [1, 1]} : vector<8x96xf32> to vector<8x8xf32>
    %cst_29 = arith.constant 0.353553385 : f32
    %64 = vector.broadcast %cst_29 : f32 to vector<8x8xf32>
    %65 = arith.mulf %63, %64 : vector<8x8xf32>
    %66 = vector.extract_strided_slice %37 {offsets = [0, 40], sizes = [8, 8], strides = [1, 1]} : vector<8x96xf32> to vector<8x8xf32>
    %67 = vector.extract_strided_slice %37 {offsets = [0, 72], sizes = [8, 8], strides = [1, 1]} : vector<8x96xf32> to vector<8x8xf32>
    %cst_30 = arith.constant dense<0.000000e+00> : vector<8x8xf32>
    %68 = tpu.matmul %65, %66, %cst_30 {dimension_numbers = #tpu.dot_dimension_numbers<[1], [1], [0], [0], [0, 0, 1, 0], [], []>} : vector<8x8xf32>, vector<8x8xf32>, vector<8x8xf32> -> vector<8x8xf32>
    %cst_31 = arith.constant -1.000000e+30 : f32
    %69 = vector.broadcast %cst_31 : f32 to vector<8x8xf32>
    %70 = arith.select %40, %68, %69 : vector<8x8xi1>, vector<8x8xf32>
    %cst_32 = arith.constant dense<0xFF800000> : vector<8xf32>
    %71 = vector.multi_reduction <maximumf>, %70, %cst_32 [1] : vector<8x8xf32> to vector<8xf32>
    %72 = vector.shape_cast %71 : vector<8xf32> to vector<8x1xf32>
    %73 = vector.broadcast %72 : vector<8x1xf32> to vector<8x8xf32>
    %74 = arith.subf %70, %73 : vector<8x8xf32>
    %75 = math.exp %74 : vector<8x8xf32>
    %cst_33 = arith.constant dense<0.000000e+00> : vector<8xf32>
    %76 = vector.multi_reduction <add>, %75, %cst_33 [1] : vector<8x8xf32> to vector<8xf32>
    %77 = vector.shape_cast %76 : vector<8xf32> to vector<8x1xf32>
    %78 = vector.broadcast %77 : vector<8x1xf32> to vector<8x8xf32>
    %79 = arith.divf %75, %78 : vector<8x8xf32>
    %cst_34 = arith.constant dense<0.000000e+00> : vector<8x8xf32>
    %80 = tpu.matmul %79, %67, %cst_34 {dimension_numbers = #tpu.dot_dimension_numbers<[1], [0], [0], [1], [0, 0, 1, 1], [], []>} : vector<8x8xf32>, vector<8x8xf32>, vector<8x8xf32> -> vector<8x8xf32>
    %c8 = arith.constant 8 : index
    %c128_35 = arith.constant 128 : index
    %81 = vector.load %arg2[%c8, %c128_35] : memref<32x512xf32, #tpu.memory_space<vmem>>, vector<8x32xf32>
    %cst_36 = arith.constant dense<0.000000e+00> : vector<8x32xf32>
    %82 = tpu.matmul %80, %81, %cst_36 {dimension_numbers = #tpu.dot_dimension_numbers<[1], [0], [0], [1], [0, 0, 1, 1], [], []>} : vector<8x8xf32>, vector<8x32xf32>, vector<8x32xf32> -> vector<8x32xf32>
    %83 = arith.addf %62, %82 : vector<8x32xf32>
    %84 = vector.extract_strided_slice %37 {offsets = [0, 16], sizes = [8, 8], strides = [1, 1]} : vector<8x96xf32> to vector<8x8xf32>
    %cst_37 = arith.constant 0.353553385 : f32
    %85 = vector.broadcast %cst_37 : f32 to vector<8x8xf32>
    %86 = arith.mulf %84, %85 : vector<8x8xf32>
    %87 = vector.extract_strided_slice %37 {offsets = [0, 48], sizes = [8, 8], strides = [1, 1]} : vector<8x96xf32> to vector<8x8xf32>
    %88 = vector.extract_strided_slice %37 {offsets = [0, 80], sizes = [8, 8], strides = [1, 1]} : vector<8x96xf32> to vector<8x8xf32>
    %cst_38 = arith.constant dense<0.000000e+00> : vector<8x8xf32>
    %89 = tpu.matmul %86, %87, %cst_38 {dimension_numbers = #tpu.dot_dimension_numbers<[1], [1], [0], [0], [0, 0, 1, 0], [], []>} : vector<8x8xf32>, vector<8x8xf32>, vector<8x8xf32> -> vector<8x8xf32>
    %cst_39 = arith.constant -1.000000e+30 : f32
    %90 = vector.broadcast %cst_39 : f32 to vector<8x8xf32>
    %91 = arith.select %40, %89, %90 : vector<8x8xi1>, vector<8x8xf32>
    %cst_40 = arith.constant dense<0xFF800000> : vector<8xf32>
    %92 = vector.multi_reduction <maximumf>, %91, %cst_40 [1] : vector<8x8xf32> to vector<8xf32>
    %93 = vector.shape_cast %92 : vector<8xf32> to vector<8x1xf32>
    %94 = vector.broadcast %93 : vector<8x1xf32> to vector<8x8xf32>
    %95 = arith.subf %91, %94 : vector<8x8xf32>
    %96 = math.exp %95 : vector<8x8xf32>
    %cst_41 = arith.constant dense<0.000000e+00> : vector<8xf32>
    %97 = vector.multi_reduction <add>, %96, %cst_41 [1] : vector<8x8xf32> to vector<8xf32>
    %98 = vector.shape_cast %97 : vector<8xf32> to vector<8x1xf32>
    %99 = vector.broadcast %98 : vector<8x1xf32> to vector<8x8xf32>
    %100 = arith.divf %96, %99 : vector<8x8xf32>
    %cst_42 = arith.constant dense<0.000000e+00> : vector<8x8xf32>
    %101 = tpu.matmul %100, %88, %cst_42 {dimension_numbers = #tpu.dot_dimension_numbers<[1], [0], [0], [1], [0, 0, 1, 1], [], []>} : vector<8x8xf32>, vector<8x8xf32>, vector<8x8xf32> -> vector<8x8xf32>
    %c16 = arith.constant 16 : index
    %c128_43 = arith.constant 128 : index
    %102 = vector.load %arg2[%c16, %c128_43] : memref<32x512xf32, #tpu.memory_space<vmem>>, vector<8x32xf32>
    %cst_44 = arith.constant dense<0.000000e+00> : vector<8x32xf32>
    %103 = tpu.matmul %101, %102, %cst_44 {dimension_numbers = #tpu.dot_dimension_numbers<[1], [0], [0], [1], [0, 0, 1, 1], [], []>} : vector<8x8xf32>, vector<8x32xf32>, vector<8x32xf32> -> vector<8x32xf32>
    %104 = arith.addf %83, %103 : vector<8x32xf32>
    %105 = vector.extract_strided_slice %37 {offsets = [0, 24], sizes = [8, 8], strides = [1, 1]} : vector<8x96xf32> to vector<8x8xf32>
    %cst_45 = arith.constant 0.353553385 : f32
    %106 = vector.broadcast %cst_45 : f32 to vector<8x8xf32>
    %107 = arith.mulf %105, %106 : vector<8x8xf32>
    %108 = vector.extract_strided_slice %37 {offsets = [0, 56], sizes = [8, 8], strides = [1, 1]} : vector<8x96xf32> to vector<8x8xf32>
    %109 = vector.extract_strided_slice %37 {offsets = [0, 88], sizes = [8, 8], strides = [1, 1]} : vector<8x96xf32> to vector<8x8xf32>
    %cst_46 = arith.constant dense<0.000000e+00> : vector<8x8xf32>
    %110 = tpu.matmul %107, %108, %cst_46 {dimension_numbers = #tpu.dot_dimension_numbers<[1], [1], [0], [0], [0, 0, 1, 0], [], []>} : vector<8x8xf32>, vector<8x8xf32>, vector<8x8xf32> -> vector<8x8xf32>
    %cst_47 = arith.constant -1.000000e+30 : f32
    %111 = vector.broadcast %cst_47 : f32 to vector<8x8xf32>
    %112 = arith.select %40, %110, %111 : vector<8x8xi1>, vector<8x8xf32>
    %cst_48 = arith.constant dense<0xFF800000> : vector<8xf32>
    %113 = vector.multi_reduction <maximumf>, %112, %cst_48 [1] : vector<8x8xf32> to vector<8xf32>
    %114 = vector.shape_cast %113 : vector<8xf32> to vector<8x1xf32>
    %115 = vector.broadcast %114 : vector<8x1xf32> to vector<8x8xf32>
    %116 = arith.subf %112, %115 : vector<8x8xf32>
    %117 = math.exp %116 : vector<8x8xf32>
    %cst_49 = arith.constant dense<0.000000e+00> : vector<8xf32>
    %118 = vector.multi_reduction <add>, %117, %cst_49 [1] : vector<8x8xf32> to vector<8xf32>
    %119 = vector.shape_cast %118 : vector<8xf32> to vector<8x1xf32>
    %120 = vector.broadcast %119 : vector<8x1xf32> to vector<8x8xf32>
    %121 = arith.divf %117, %120 : vector<8x8xf32>
    %cst_50 = arith.constant dense<0.000000e+00> : vector<8x8xf32>
    %122 = tpu.matmul %121, %109, %cst_50 {dimension_numbers = #tpu.dot_dimension_numbers<[1], [0], [0], [1], [0, 0, 1, 1], [], []>} : vector<8x8xf32>, vector<8x8xf32>, vector<8x8xf32> -> vector<8x8xf32>
    %c24 = arith.constant 24 : index
    %c128_51 = arith.constant 128 : index
    %123 = vector.load %arg2[%c24, %c128_51] : memref<32x512xf32, #tpu.memory_space<vmem>>, vector<8x32xf32>
    %cst_52 = arith.constant dense<0.000000e+00> : vector<8x32xf32>
    %124 = tpu.matmul %122, %123, %cst_52 {dimension_numbers = #tpu.dot_dimension_numbers<[1], [0], [0], [1], [0, 0, 1, 1], [], []>} : vector<8x8xf32>, vector<8x32xf32>, vector<8x32xf32> -> vector<8x32xf32>
    %125 = arith.addf %104, %124 : vector<8x32xf32>
    %126 = arith.addf %1, %125 : vector<8x32xf32>
    %127 = vector.broadcast %6 : vector<1x32xf32> to vector<8x32xf32>
    %128 = arith.addf %126, %127 : vector<8x32xf32>
    %cst_53 = arith.constant dense<0.000000e+00> : vector<8xf32>
    %129 = vector.multi_reduction <add>, %128, %cst_53 [1] : vector<8x32xf32> to vector<8xf32>
    %130 = vector.shape_cast %129 : vector<8xf32> to vector<8x1xf32>
    %cst_54 = arith.constant 3.200000e+01 : f32
    %131 = vector.broadcast %cst_54 : f32 to vector<8x1xf32>
    %132 = arith.divf %130, %131 : vector<8x1xf32>
    %133 = vector.broadcast %132 : vector<8x1xf32> to vector<8x32xf32>
    %134 = arith.subf %128, %133 : vector<8x32xf32>
    %135 = arith.mulf %134, %134 : vector<8x32xf32>
    %cst_55 = arith.constant dense<0.000000e+00> : vector<8xf32>
    %136 = vector.multi_reduction <add>, %135, %cst_55 [1] : vector<8x32xf32> to vector<8xf32>
    %137 = vector.shape_cast %136 : vector<8xf32> to vector<8x1xf32>
    %cst_56 = arith.constant 3.200000e+01 : f32
    %138 = vector.broadcast %cst_56 : f32 to vector<8x1xf32>
    %139 = arith.divf %137, %138 : vector<8x1xf32>
    %140 = vector.broadcast %132 : vector<8x1xf32> to vector<8x32xf32>
    %141 = arith.subf %128, %140 : vector<8x32xf32>
    %cst_57 = arith.constant 9.99999974E-6 : f32
    %142 = vector.broadcast %cst_57 : f32 to vector<8x1xf32>
    %143 = arith.addf %139, %142 : vector<8x1xf32>
    %144 = math.rsqrt %143 : vector<8x1xf32>
    %145 = vector.broadcast %144 : vector<8x1xf32> to vector<8x32xf32>
    %146 = arith.mulf %141, %145 : vector<8x32xf32>
    %147 = vector.broadcast %4 : vector<1x32xf32> to vector<8x32xf32>
    %148 = arith.mulf %146, %147 : vector<8x32xf32>
    %149 = vector.broadcast %5 : vector<1x32xf32> to vector<8x32xf32>
    %150 = arith.addf %148, %149 : vector<8x32xf32>
    %cst_58 = arith.constant dense<0.000000e+00> : vector<8x128xf32>
    %151 = tpu.matmul %150, %11, %cst_58 {dimension_numbers = #tpu.dot_dimension_numbers<[1], [0], [0], [1], [0, 0, 1, 1], [], []>} : vector<8x32xf32>, vector<32x128xf32>, vector<8x128xf32> -> vector<8x128xf32>
    %152 = vector.broadcast %9 : vector<1x128xf32> to vector<8x128xf32>
    %153 = arith.addf %151, %152 : vector<8x128xf32>
    %cst_59 = arith.constant 1.702000e+00 : f32
    %154 = vector.broadcast %cst_59 : f32 to vector<8x128xf32>
    %155 = arith.mulf %154, %153 : vector<8x128xf32>
    %156 = arith.negf %155 : vector<8x128xf32>
    %157 = math.exp %156 : vector<8x128xf32>
    %cst_60 = arith.constant 1.000000e+00 : f32
    %158 = vector.broadcast %cst_60 : f32 to vector<8x128xf32>
    %159 = arith.addf %158, %157 : vector<8x128xf32>
    %160 = arith.divf %158, %159 : vector<8x128xf32>
    %161 = arith.mulf %153, %160 : vector<8x128xf32>
    %cst_61 = arith.constant dense<0.000000e+00> : vector<8x32xf32>
    %162 = tpu.matmul %161, %12, %cst_61 {dimension_numbers = #tpu.dot_dimension_numbers<[1], [1], [0], [0], [0, 0, 1, 0], [], []>} : vector<8x128xf32>, vector<32x128xf32>, vector<8x32xf32> -> vector<8x32xf32>
    %163 = vector.broadcast %7 : vector<1x32xf32> to vector<8x32xf32>
    %164 = arith.addf %162, %163 : vector<8x32xf32>
    %165 = arith.addf %128, %164 : vector<8x32xf32>
    %c0_62 = arith.constant 0 : index
    %c0_63 = arith.constant 0 : index
    %c0_64 = arith.constant 0 : index
    %166 = vector.load %arg4[%c0_62, %c0_63, %c0_64] : memref<1x8x32xf32, #tpu.memory_space<vmem>>, vector<1x8x32xf32>
    %167 = vector.shape_cast %166 : vector<1x8x32xf32> to vector<8x32xf32>
    %168 = vector.shape_cast %165 : vector<8x32xf32> to vector<1x8x32xf32>
    tpu.vector_store %arg4[%c0_62, %c0_63, %c0_64], %168 {strides = array<i32>} : memref<1x8x32xf32, #tpu.memory_space<vmem>>, vector<1x8x32xf32>,
    return
  }
  func.func @transform_0(%arg0: i32) -> (i32, i32, i32) {
    %c0_i32 = arith.constant 0 : i32
    %c0_i32_0 = arith.constant 0 : i32
    %c0_i32_1 = arith.constant 0 : i32
    return %arg0, %c0_i32, %c0_i32_0 : i32, i32, i32
  }
  func.func @transform_1(%arg0: i32) -> (i32, i32) {
    %c0_i32 = arith.constant 0 : i32
    %c0_i32_0 = arith.constant 0 : i32
    %c0_i32_1 = arith.constant 0 : i32
    return %c0_i32, %c0_i32_0 : i32, i32
  }
  func.func @transform_2(%arg0: i32) -> (i32, i32) {
    %c0_i32 = arith.constant 0 : i32
    %c0_i32_0 = arith.constant 0 : i32
    %c0_i32_1 = arith.constant 0 : i32
    return %c0_i32, %c0_i32_0 : i32, i32
  }
  func.func @transform_3(%arg0: i32) -> (i32, i32, i32) {
    %c0_i32 = arith.constant 0 : i32
    %c0_i32_0 = arith.constant 0 : i32
    %c0_i32_1 = arith.constant 0 : i32
    return %arg0, %c0_i32, %c0_i32_0 : i32, i32, i32
  }
}

</mosaic_0001>

<bundles_post_ra>
// kernel: tpu_custom_call.1
= control target key start
LH: loop header
LB: loop body
LE: loop exit
PB: predicated region body
PF: predicated region fallthrough
CT: control target
= control target key end

     0   :  { %8 = vsyncpa [#allocation3], 0  ;;  %s2362_s0 = inlined_call_operand.hbm [shape: f32[2,8,32], index: 0, kind: input, shape index: {}]   ;;  %s2363_s1 = inlined_call_operand.hbm [shape: f32[32,512], index: 1, kind: input, shape index: {}]   ;;  %s2364_s2 = inlined_call_operand.hbm [shape: f32[8,128], index: 2, kind: input, shape index: {}]   ;;  %s2365_s3 = inlined_call_operand.hbm [shape: f32[2,8,32], index: 3, kind: output, shape index: {}]  }
   0x1   :  { %10 = vsyncpa [#allocation3 + $0x1], 0 }
   0x2   :  { %11 = vsyncpa [#allocation6], 0 }
   0x3   :  { %12 = vsyncpa [#allocation4], 0 }
   0x4   :  { %14 = vsyncpa [#allocation4 + $0x1], 0  ;;  %s2068_s12 = smov 0   ;;  %s2070_s13 = smov 0  }
   0x5   :  { %s2072_s14 = smov 0   ;;  %s2074_s15 = smov 0  }
   0x6 LB: > { %s2089_s16 = sadd.s32 4294967295, %s2027_s15   ;;  %s1598_s17 = sadd.s32 4294967294, %s2027_s15   ;;  %s2027_s15 = sphi %s2074_s15, %s2387_s15   ;;  %s2023_s14 = sphi %s2072_s14, %s2386_s14   ;;  %s2019_s13 = sphi %s2070_s13, %s2385_s13   ;;  %s2015_s12 = sphi %s2068_s12, %s2384_s12  }
   0x7   : > { %p40_p0 = scmp.ne.s32.totalorder %s2019_s13, %s2015_s12  ;;  %p2366_p1 = scmp.eq.s32.totalorder %s2089_s16, 0 }
   0x8   : > { %p112_p3 = scmp.eq.s32.totalorder %s1598_s17, 1  ;;  %p1599_p5 = scmp.ge.s32.totalorder %s2027_s15, 1 }
   0x9   : > { %p2098_p4 = por %p2366_p1, %p40_p0  ;;  %p119_p7 = scmp.lt.s32.totalorder %s2027_s15, 3 }
   0xa   : > { %p2103_p6 = por %p112_p3, %p40_p0  ;;  %s2029_s21 = smov [#allocation5]  }
   0xb   : > { %s2370_s18 = scalar_select %p2098_p4, 1, 0 }
   0xc   : > { %s2371_s19 = scalar_select %p2103_p6, 1, 0 }
   0xd   : > { %p2108_p8 = pnand %p1599_p5, %p119_p7  ;;  %s131_s22 = sshll.u32 %s2029_s21, 4  ;;  %s132_s22 = int_to_ptr.vmem [resolvable:$true] %s131_s22 }
   0xe   : > { %s2030_s24 = smov [#allocation7]   ;;  %s1890_s26 = scalar_lea.vmem %s132_s22, 2048 }
   0xf   : > { %s2372_s20 = scalar_select %p2108_p8, 1, 0 }
  0x10   : > { %p1785_p9 = pneg %p2108_p8  ;;  %s145_s25 = sshll.u32 %s2030_s24, 4  ;;  %s146_s25 = int_to_ptr.vmem [resolvable:$true] %s145_s25 }
  0x11   : > { %p1891_p13 = scmp.ne.s32.totalorder %s132_s22, %s1890_s26  ;;  %p1898_p5 = scmp.lt.s32.totalorder %s132_s22, %s132_s22 }
  0x12   : > { %p2117_p11 = pnand %p1785_p9, %p2366_p1  ;;  %p1899_p7 = scmp.lt.s32.totalorder %s1890_s26, %s1890_s26 }
  0x14   : > { %p1881_p12 = pneg %p2117_p11  ;;  %p1900_p10 = por %p1899_p7, %p1898_p5 }
  0x16   : > { %p1893_p0 = pnand %p1891_p13, %p1881_p12 }
  0x18   : > { %p1894_p3 = pneg %p1893_p0 }
  0x1a   : > { %p1901_p9 = pnand %p1900_p10, %p1894_p3 }
  0x1c   : > { %1904 = shalt.err (!%p1901_p9)
}
  0x1d   : > { %s2031_s27 = smov 512   ;;  %s2032_s28 = smov 32  }
  0x1e   : > { %1788 = dma.hbm_to_vmem [thread:$0]  (!%p2117_p11), %s2363_s1, 2048, %s132_s22, [#allocation6], %s2031_s27, %s2031_s27, %s2032_s28  }
  0x1f   : > { %s1916_s4 = scalar_lea.vmem %s146_s25, 128  ;;  %p1924_p2 = scmp.lt.s32.totalorder %s146_s25, %s146_s25 }
  0x20   : > { %p1917_p1 = scmp.ne.s32.totalorder %s146_s25, %s1916_s4  ;;  %p1925_p6 = scmp.lt.s32.totalorder %s1916_s4, %s1916_s4 }
  0x22   : > { %p1919_p13 = pnand %p1917_p1, %p1881_p12  ;;  %p1926_p5 = por %p1925_p6, %p1924_p2 }
  0x24   : > { %p1920_p0 = pneg %p1919_p13 }
  0x26   : > { %p1927_p10 = pnand %p1926_p5, %p1920_p0 }
  0x28   : > { %1930 = shalt.err (!%p1927_p10)
}
  0x29   : > { %1791 = dma.hbm_to_vmem [thread:$0]  (!%p2117_p11), %s2364_s2, 128, %s146_s25, [#allocation6]  }
  0x2a   : > { %s2140_s7 = sadd.s32 1, %s2027_s15   ;;  %s27_s8 = sadd.s32 1, %s2023_s14 }
  0x2b   : > { %s24_s9 = ssub.s32 %s2027_s15, %s2140_s7  ;;  %p34_p1 = scmp.ne.s32.totalorder %s2023_s14, %s2019_s13 }
  0x2c   : > { %p25_p2 = scmp.eq.s32.totalorder %s24_s9, 0  ;;  %p35_p6 = scmp.eq.s32.totalorder %s2027_s15, 0 }
  0x2d   : > { %p2374_p12 = scmp.eq.s32.totalorder %s2089_s16, 1  ;;  %p1802_p7 = scmp.lt.s32.totalorder %s2027_s15, 2 }
  0x2e   : > { %s2156_s11 = scalar_select %p25_p2, %s2023_s14, %s27_s8  }
  0x2f   : > { %p2150_p3 = por %p2374_p12, %p34_p1  ;;  %p36_p9 = por %p35_p6, %p34_p1 }
  0x30   : > { %s156_s17 = sand.u32 1, %s2023_s14   ;;  %s1604_s22 = sshll.u32 %s2027_s15, 7 }
  0x31   : > { %s2375_s10 = scalar_select %p2150_p3, 1, 0 }
  0x32   : > { %s1603_s21 = sshll.u32 %s156_s17, 3  ;;  %s2163_s25 = scalar_lea.hbm %s2362_s0, %s1604_s22 }
  0x33   : > { %s160_s26 = scalar_lea.vmem [#allocation2], %s1603_s21  ;;  %p2165_p11 = pnand %p1802_p7, %p36_p9 }
  0x34   : > { %s167_s27 = sshll.u32 %s160_s26, 4  ;;  %s157_s29 = scalar_lea.sflag [#allocation3], %s156_s17  ;;  %s168_s27 = int_to_ptr.vmem [resolvable:$true] %s167_s27 }
  0x35   : > { %s1931_s30 = scalar_lea.hbm %s2163_s25, 128  ;;  %p1933_p0 = pneg %p2165_p11 }
  0x36   : > { %p1932_p13 = scmp.ne.s32.totalorder %s2163_s25, %s1931_s30  ;;  %s1936_s6 = scalar_lea.hbm %s2362_s0, 256 }
  0x37   : > { %p1937_p1 = scmp.lt.s32.totalorder %s2163_s25, %s2362_s0  ;;  %p1938_p2 = scmp.lt.s32.totalorder %s1936_s6, %s1931_s30 }
  0x38   : > { %p1934_p5 = pnand %p1933_p0, %p1932_p13 }
  0x39   : > { %p1939_p6 = por %p1938_p2, %p1937_p1 }
  0x3a   : > { %p1935_p10 = pneg %p1934_p5 }
  0x3c   : > { %p1940_p12 = pnand %p1939_p6, %p1935_p10 }
  0x3e   : > { %1943 = shalt.err (!%p1940_p12)
}
  0x3f   : > { %s1944_s21 = scalar_lea.vmem %s168_s27, 128  ;;  %s2033_s17 = smov [#allocation2]  }
  0x40   : > { %p1945_p7 = scmp.ne.s32.totalorder %s168_s27, %s1944_s21  ;;  %s1949_s22 = sshll.u32 %s2033_s17, 4  ;;  %s1950_s22 = int_to_ptr.vmem [resolvable:$false] %s1949_s22 }
  0x41   : > { %s1951_s23 = scalar_lea.vmem %s1950_s22, 256  ;;  %p1952_p13 = scmp.lt.s32.totalorder %s168_s27, %s1950_s22 }
  0x42   : > { %p1947_p9 = pnand %p1945_p7, %p1933_p0  ;;  %p1953_p5 = scmp.lt.s32.totalorder %s1951_s23, %s1944_s21 }
  0x44   : > { %p1948_p3 = pneg %p1947_p9  ;;  %p1954_p4 = por %p1953_p5, %p1952_p13 }
  0x46   : > { %p1955_p8 = pnand %p1954_p4, %p1948_p3 }
  0x48   : > { %1958 = shalt.err (!%p1955_p8)
}
  0x49   : > { %1795 = dma.hbm_to_vmem [thread:$0]  (!%p2165_p11), %s2163_s25, 128, %s168_s27, %s157_s29  }
  0x4a   : > { %p2377_p10 = scmp.ne.s32.totalorder %s2372_s20, 0 }
  0x4b   : > { %s2186_s24 = sand.u32 (!%p2377_p10), 1, %s2019_s13   ;;  %p2378_p4 = scmp.ne.s32.totalorder (!%p2377_p10), %s2370_s18, 0 }
  0x4c   : > { %176 = sbr.rel (%p2377_p10) target bundleno = 3571 (0xdf3), region = 32  ;;  %s1606_s26 = sshll.u32 (!%p2377_p10), %s2186_s24, 3 }
  0x4d   : > { %s179_s30 = scalar_lea.sflag (!%p2377_p10), [#allocation3], %s2186_s24  ;;  %s182_s4 = scalar_lea.vmem (!%p2377_p10), [#allocation2], %s1606_s26 }
  0x51   : > { %2002 = dma.done.wait (%p2378_p4), %s179_s30, 128  }
  0x52   : > { %2004 = vsyncadd (%p2378_p4), %s179_s30, 4294967168  ;;  %p2379_p8 = scmp.eq.s32.totalorder %s2089_s16, 0 }
  0x54   : > { %2006 = dma.done.wait (%p2379_p8), [#allocation6], 2176   ;;  %p2380_p3 = pmov %p2379_p8 }
  0x55   : > { %vm234_vm0 = vcmask 261120   ;;  %v2200_v0 = vld [vmem:[%s182_s4] sm:$0xff]  ;;  %v225_v7 = vld [vmem:[#allocation5 + $0x60] sm:$0xff]  ;;  %v2034_v8 = vmov 0.0   ;;  %vm2035_vm1 = vmmov 0   ;;  %s2036_s18 = smov 96   ;;  %v336_v29 = vlaneseq }
  0x56   : > { %2008 = vsyncadd (%p2380_p3), [#allocation6], 4294965120  ;;  %v235_v1 = vsel %vm234_vm0, %v2200_v0, 0.0  ;;  %1680 = vmatprep.subr.mxu0 %v2034_v8  ;;  %v224_v9 = vld [vmem:[#allocation5 + $0x40] sm:$0xff]  ;;  %1688 = vmatprep.mubr.msk.f32.mxu0 %vm2035_vm1, %v2034_v8  ;;  %s2037_s20 = smov 120   ;;  %s2038_s25 = smov 88  }
  0x57   : > { %236 = vadd.xlane.f32.xlu0 %v235_v1  ;;  %1681 = vmatpush3.msra.mxu0 %v225_v7  ;;  %v223_v10 = vld [vmem:[#allocation5 + $0x20] sm:$0xff]  ;;  %vm345_vm2 = vcmask 64512   ;;  %v2238_v30 = vshrl.u32 %v336_v29, 7  ;;  %v2240_v31 = vand.u32 127, %v336_v29  ;;  %s2039_s27 = smov 56   ;;  %s2040_s28 = smov 64  }
  0x58   : > { %1696 = vmatprep.subr.mxu1 %v2034_v8  ;;  %1682 = vmatprep.subr.mxu0 %v2034_v8  ;;  %v222_v11 = vld [vmem:[#allocation5] sm:$0xff]  ;;  %s2041_s29 = smov 80   ;;  %s2042_s5 = smov 112   ;;  %v509_v58 = vld [vmem:[#allocation5 + $0x8] sm:$0xff] }
  0x59   : > { %1698 = vmatprep.mubr.msk.f32.mxu1 %vm2035_vm1, %v2034_v8  ;;  %1683 = vmatpush3.msra.mxu0 %v224_v9  ;;  %v1610_v16 = vld [vmem:[#allocation7] ss:$0 sm:$0xff]  ;;  %v1611_v18 = vld [vmem:[#allocation7 + $0x1] ss:$0 sm:$0xff]  ;;  %v1612_v21 = vld [vmem:[#allocation7 + $0x6] ss:$0 sm:$0xff]  ;;  %vm340_vm3 = vcmp.le.s32.totalorder %v2240_v31, %v2238_v30 }
  0x5a   : > { %1684 = vmatprep.subr.mxu0 %v2034_v8  ;;  %v676_v59 = vld [vmem:[#allocation5 + $0x28] sm:$0xff]  ;;  %s2043_s6 = smov 48   ;;  %s2044_s8 = smov 104  }
  0x5b   : > { %1685 = vmatpush3.msra.mxu0 %v223_v10  ;;  %s2045_s9 = smov 72   ;;  %s2046_s21 = smov 40  }
  0x5c   : > { %1686 = vmatprep.subr.mxu0 %v2034_v8  ;;  %s1638_s17 = sshll.u32 %s2089_s16, 7  ;;  %s212_s22 = scalar_lea.vmem [#allocation8], %s1606_s26 }
  0x5d   : > { %1687 = vmatpush3.msra.mxu0 %v222_v11  ;;  %s1509_s23 = sshll.u32 %s212_s22, 4  ;;  %p2381_p0 = scmp.ne.s32.totalorder %s2375_s10, 0  ;;  %s1510_s23 = int_to_ptr.vmem [resolvable:$true] %s1509_s23 }
  0x5e   : > { %1691 = vmatprep.subr.mxu0 %v2034_v8  ;;  %s2047_s16 = smov [#allocation8]  }
  0xe0   : > { %v237_v2 = vpop.xlane.xlu0 %236 }
  0xe1   : > { %v239_v3 = vmul.f32 0.03125, %v237_v2 }
  0xe3   : > { %v240_v4 = vsub.f32 %v2200_v0, %v239_v3 }
  0xe5   : > { %v241_v5 = vmul.f32 %v240_v4, %v240_v4 }
  0xe7   : > { %v242_v6 = vsel %vm234_vm0, %v241_v5, 0.0 }
  0xe8   : > { %243 = vadd.xlane.f32.xlu0 %v242_v6 }
 0x171   : > { %v244_v12 = vpop.xlane.xlu0 %243 }
 0x172   : > { %v245_v13 = vmul.f32 0.03125, %v244_v12 }
 0x174   : > { %v246_v14 = vadd.f32 1e-05, %v245_v13 }
 0x176   : > { %1855 = vrsqrt.f32 %v246_v14 }
 0x183   : > { %v1856_v15 = vpop.eup %1855 }
 0x184   : > { %v248_v17 = vmul.f32 %v1856_v15, %v240_v4 }
 0x186   : > { %v253_v19 = vmul.f32 %v1610_v16, %v248_v17 }
 0x188   : > { %v258_v20 = vadd.f32 %v1611_v18, %v253_v19 }
 0x18a   : > { %1689 = vmatmul.mubr.msk.f32.vlgmr.msra.gmra.mxu0 %vm234_vm0, %v258_v20 }
 0x18b   : > { %1693 = vmatprep.mubr.msk.f32.mxu0 %vm2035_vm1, %v2034_v8 }
 0x24a   : > { %v332_v22 = vpop.f32.mrf.mxu0 }
 0x24b   : > { %v2219_v23 = vadd.f32 %v1612_v21, %v332_v22 }
 0x24c   : > { %v1690_v24 = vpop.f32.mrf.mxu0 }
 0x24d   : > { %343 = vrot.lane.b32.xlu1 %v2219_v23, %s2036_s18  ;;  %v2223_v25 = vmul.f32 0.35355338, %v2219_v23  ;;  %s1507_s18 = scalar_lea.hbm %s2365_s3, %s1638_s17 }
 0x24f   : > { %510 = vrot.lane.b32.xlu0 %v2223_v25, %s2037_s20  ;;  %s1496_s20 = scalar_lea.sflag [#allocation4], %s2186_s24 }
 0x251   : > { %512 = vrot.lane.b32.xlu1 %v2219_v23, %s2038_s25  ;;  %s1959_s25 = scalar_lea.vmem %s1510_s23, 128 }
 0x252   : > { %p1960_p11 = scmp.ne.s32.totalorder %s1510_s23, %s1959_s25 }
 0x254   : > { %p1961_p1 = pnand %p1960_p11, %p2381_p0 }
 0x256   : > { %p1962_p2 = pneg %p1961_p1 }
 0x2bf   : > { %v344_v26 = vpop.permute.xlu1 %343 }
 0x2c0   : > { %1692 = vmatpush3.xpose.msk.msra.mxu0 %vm345_vm2, %v344_v26 }
 0x2c1   : > { %1701 = vmatprep.subr.mxu0 %v2034_v8  ;;  %v511_v28 = vpop.permute.xlu0 %510 }
 0x2c3   : > { %v513_v27 = vpop.permute.xlu1 %512  ;;  %1694 = vmatmul.mubr.msk.f32.vlgmr.msra.gmra.mxu0 %vm345_vm2, %v2223_v25 }
 0x2c4   : > { %1702 = vmatpush3.xpose.msk.msra.mxu0 %vm345_vm2, %v513_v27  ;;  %1703 = vmatprep.mubr.msk.f32.mxu0 %vm2035_vm1, %v2034_v8 }
 0x2c5   : > { %1711 = vmatprep.subr.mxu0 %v2034_v8 }
 0x2c7   : > { %1704 = vmatmul.mubr.msk.f32.vlgmr.msra.gmra.mxu0 %vm345_vm2, %v511_v28 }
 0x2c8   : > { %1713 = vmatprep.mubr.msk.f32.mxu0 %vm2035_vm1, %v2034_v8  ;;  %1712 = vmatpush3.msra.mxu0 %v676_v59  ;;  %v228_v59 = vld [vmem:[#allocation5 + $0x50] sm:$0xff] }
 0x2c9   : > { %1721 = vmatprep.subr.mxu0 %v2034_v8 }
 0x383   : > { %v417_v32 = vpop.f32.mrf.mxu0 }
 0x384   : > { %v421_v33 = vsel %vm340_vm3, %v417_v32, -1e+30 }
 0x385   : > { %v1695_v34 = vpop.f32.mrf.mxu0  ;;  %v422_v35 = vsel %vm345_vm2, %v421_v33, -inf }
 0x386   : > { %423 = vmax.xlane.f32.xlu1 %v422_v35 }
 0x387   : > { %v584_v36 = vpop.f32.mrf.mxu0 }
 0x388   : > { %v588_v37 = vsel %vm340_vm3, %v584_v36, -1e+30 }
 0x389   : > { %v1705_v38 = vpop.f32.mrf.mxu0  ;;  %v589_v39 = vsel %vm345_vm2, %v588_v37, -inf }
 0x38a   : > { %590 = vmax.xlane.f32.xlu0 %v589_v39  ;;  %v1230_v39 = vld [vmem:[#allocation5 + $0x68] sm:$0xff] }
 0x3a0   : > { %600 = vrot.lane.b32.xlu0 %v2219_v23, %s2039_s27  ;;  %s1963_s27 = sshll.u32 %s2047_s16, 4  ;;  %s1964_s27 = int_to_ptr.vmem [resolvable:$false] %s1963_s27 }
 0x3a1   : > { %s1965_s26 = scalar_lea.vmem %s1964_s27, 256  ;;  %p1966_p6 = scmp.lt.s32.totalorder %s1510_s23, %s1964_s27 }
 0x3a2   : > { %p1967_p12 = scmp.lt.s32.totalorder %s1965_s26, %s1959_s25 }
 0x3a4   : > { %p1968_p7 = por %p1967_p12, %p1966_p6 }
 0x3a6   : > { %p1969_p9 = pnand %p1968_p7, %p1962_p2 }
 0x40f   : > { %v424_v40 = vpop.xlane.xlu1 %423 }
 0x410   : > { %v425_v41 = vsub.f32 %v421_v33, %v424_v40 }
 0x412   : > { %v426_v42 = vmul.f32 1.442695, %v425_v41 }
 0x413   : > { %v591_v43 = vpop.xlane.xlu0 %590 }
 0x414   : > { %1857 = vpow2.f32 %v426_v42  ;;  %v592_v44 = vsub.f32 %v588_v37, %v591_v43 }
 0x416   : > { %v593_v45 = vmul.f32 1.442695, %v592_v44 }
 0x417   : > { %v601_v55 = vpop.permute.xlu0 %600 }
 0x418   : > { %1859 = vpow2.f32 %v593_v45 }
 0x421   : > { %v1858_v46 = vpop.eup %1857 }
 0x422   : > { %v428_v47 = vsel %vm345_vm2, %v1858_v46, 0.0 }
 0x423   : > { %429 = vadd.xlane.f32.xlu1 %v428_v47 }
 0x425   : > { %v1860_v48 = vpop.eup %1859 }
 0x426   : > { %v595_v49 = vsel %vm345_vm2, %v1860_v48, 0.0 }
 0x427   : > { %596 = vadd.xlane.f32.xlu1 %v595_v49 }
 0x438   : > { %433 = vrot.lane.b32.xlu1 %v2219_v23, %s2040_s28 }
 0x43c   : > { %825 = vrot.lane.b32.xlu1 %v2219_v23, %s2041_s29 }
 0x440   : > { %823 = vrot.lane.b32.xlu1 %v2223_v25, %s2042_s5 }
 0x4ac   : > { %v430_v50 = vpop.xlane.xlu1 %429 }
 0x4ad   : > { %1861 = vrcp.f32 %v430_v50 }
 0x4b0   : > { %v597_v51 = vpop.xlane.xlu1 %596 }
 0x4b1   : > { %1863 = vrcp.f32 %v597_v51 }
 0x4b4   : > { %v434_v52 = vpop.permute.xlu1 %433 }
 0x4b5   : > { %1697 = vmatpush3.msra.mxu1 %v434_v52 }
 0x4b6   : > { %1706 = vmatprep.subr.mxu1 %v2034_v8 }
 0x4b8   : > { %v826_v61 = vpop.permute.xlu1 %825 }
 0x4ba   : > { %v1862_v53 = vpop.eup %1861 }
 0x4bb   : > { %v432_v54 = vmul.f32 %v1862_v53, %v1858_v46 }
 0x4bc   : > { %v824_v2 = vpop.permute.xlu1 %823 }
 0x4bd   : > { %1699 = vmatmul.mubr.msk.f32.vlgmr.msra.gmra.mxu1 %vm345_vm2, %v432_v54 }
 0x4be   : > { %v1864_v56 = vpop.eup %1863  ;;  %1707 = vmatpush3.msra.mxu1 %v601_v55  ;;  %1708 = vmatprep.mubr.msk.f32.mxu1 %vm2035_vm1, %v2034_v8 }
 0x4bf   : > { %v599_v57 = vmul.f32 %v1864_v56, %v1860_v48  ;;  %1716 = vmatprep.subr.mxu1 %v2034_v8  ;;  %v1630_v48 = vld [vmem:[#allocation7 + $0x4] ss:$0 sm:$0xff] }
 0x4c1   : > { %1709 = vmatmul.mubr.msk.f32.vlgmr.msra.gmra.mxu1 %vm345_vm2, %v599_v57 }
 0x4c2   : > { %1718 = vmatprep.mubr.msk.f32.mxu1 %vm2035_vm1, %v2034_v8  ;;  %1717 = vmatpush3.msra.mxu1 %v509_v58  ;;  %v229_v58 = vld [vmem:[#allocation5 + $0x70] sm:$0xff] }
 0x4c3   : > { %1726 = vmatprep.subr.mxu1 %v2034_v8 }
 0x57d   : > { %v505_v60 = vpop.f32.mrf.mxu1 }
 0x57e   : > { %1719 = vmatmul.mubr.msk.f32.vlgmr.msra.gmra.mxu1 %vm345_vm2, %v505_v60  ;;  %v227_v60 = vld [vmem:[#allocation5 + $0x30] sm:$0xff] }
 0x57f   : > { %v1700_v62 = vpop.f32.mrf.mxu1  ;;  %1728 = vmatprep.mubr.msk.f32.mxu1 %vm2035_vm1, %v2034_v8 }
 0x581   : > { %v672_v63 = vpop.f32.mrf.mxu1 }
 0x582   : > { %1714 = vmatmul.mubr.msk.f32.vlgmr.msra.gmra.mxu0 %vm345_vm2, %v672_v63 }
 0x583   : > { %1722 = vmatpush3.xpose.msk.msra.mxu0 %vm345_vm2, %v826_v61  ;;  %v1710_v1 = vpop.f32.mrf.mxu1  ;;  %1723 = vmatprep.mubr.msk.f32.mxu0 %vm2035_vm1, %v2034_v8 }
 0x584   : > { %1731 = vmatprep.subr.mxu0 %v2034_v8 }
 0x586   : > { %1724 = vmatmul.mubr.msk.f32.vlgmr.msra.gmra.mxu0 %vm345_vm2, %v824_v2  ;;  %v1631_v2 = vld [vmem:[#allocation7 + $0x2] ss:$0 sm:$0xff] }
 0x587   : > { %1733 = vmatprep.mubr.msk.f32.mxu0 %vm2035_vm1, %v2034_v8 }
 0x63e   : > { %v819_v3 = vpop.f32.mrf.mxu1 }
 0x640   : > { %v1720_v4 = vpop.f32.mrf.mxu1 }
 0x641   : > { %v1632_v4 = vld [vmem:[#allocation7 + $0x3] ss:$0 sm:$0xff] }
 0x642   : > { %v746_v5 = vpop.f32.mrf.mxu0 }
 0x643   : > { %v820_v6 = vadd.f32 %v819_v3, %v746_v5 }
 0x644   : > { %v1715_v7 = vpop.f32.mrf.mxu0 }
 0x645   : > { %v233_v7 = vld [vmem:[#allocation5 + $0x78] sm:$0xff] }
 0x646   : > { %v897_v9 = vpop.f32.mrf.mxu0 }
 0x647   : > { %v901_v10 = vsel %vm340_vm3, %v897_v9, -1e+30  ;;  %v232_v9 = vld [vmem:[#allocation5 + $0x58] sm:$0xff] }
 0x648   : > { %v1725_v11 = vpop.f32.mrf.mxu0  ;;  %v902_v12 = vsel %vm345_vm2, %v901_v10, -inf }
 0x649   : > { %903 = vmax.xlane.f32.xlu1 %v902_v12  ;;  %v230_v11 = vld [vmem:[#allocation5 + $0x18] sm:$0xff]  ;;  %v1633_v12 = vld [vmem:[#allocation7 + $0x7] ss:$0 sm:$0xff] }
 0x65a   : > { %913 = vrot.lane.b32.xlu1 %v2219_v23, %s2043_s6 }
 0x65e   : > { %1064 = vrot.lane.b32.xlu1 %v2223_v25, %s2044_s8  ;;  %v989_v25 = vld [vmem:[#allocation5 + $0x48] sm:$0xff] }
 0x65f   : > { %1732 = vmatpush3.msra.mxu0 %v989_v25 }
 0x660   : > { %1741 = vmatprep.subr.mxu0 %v2034_v8 }
 0x6d2   : > { %v904_v13 = vpop.xlane.xlu1 %903 }
 0x6d3   : > { %v905_v14 = vsub.f32 %v901_v10, %v904_v13  ;;  %v231_v10 = vld [vmem:[#allocation5 + $0x38] sm:$0xff] }
 0x6d5   : > { %v906_v15 = vmul.f32 1.442695, %v905_v14 }
 0x6d6   : > { %v914_v16 = vpop.permute.xlu1 %913 }
 0x6d7   : > { %1865 = vpow2.f32 %v906_v15  ;;  %1727 = vmatpush3.msra.mxu1 %v914_v16 }
 0x6d8   : > { %1736 = vmatprep.subr.mxu1 %v2034_v8 }
 0x6da   : > { %v1065_v24 = vpop.permute.xlu1 %1064 }
 0x6e4   : > { %v1866_v17 = vpop.eup %1865 }
 0x6e5   : > { %v908_v18 = vsel %vm345_vm2, %v1866_v17, 0.0 }
 0x6e6   : > { %909 = vadd.xlane.f32.xlu0 %v908_v18 }
 0x6fc   : > { %1066 = vrot.lane.b32.xlu0 %v2219_v23, %s2045_s9 }
 0x76f   : > { %v910_v19 = vpop.xlane.xlu0 %909 }
 0x770   : > { %1867 = vrcp.f32 %v910_v19 }
 0x773   : > { %v1067_v22 = vpop.permute.xlu0 %1066 }
 0x77d   : > { %v1868_v20 = vpop.eup %1867 }
 0x77e   : > { %v912_v21 = vmul.f32 %v1868_v20, %v1866_v17 }
 0x780   : > { %1729 = vmatmul.mubr.msk.f32.vlgmr.msra.gmra.mxu1 %vm345_vm2, %v912_v21 }
 0x781   : > { %1737 = vmatpush3.xpose.msk.msra.mxu1 %vm345_vm2, %v1067_v22  ;;  %1738 = vmatprep.mubr.msk.f32.mxu1 %vm2035_vm1, %v2034_v8 }
 0x782   : > { %1746 = vmatprep.subr.mxu1 %v2034_v8 }
 0x784   : > { %1739 = vmatmul.mubr.msk.f32.vlgmr.msra.gmra.mxu1 %vm345_vm2, %v1065_v24 }
 0x785   : > { %1748 = vmatprep.mubr.msk.f32.mxu1 %vm2035_vm1, %v2034_v8  ;;  %1747 = vmatpush3.msra.mxu1 %v1230_v39 }
 0x786   : > { %1762 = vmatprep.subr.mxu1 %v2034_v8 }
 0x840   : > { %v985_v26 = vpop.f32.mrf.mxu1 }
 0x841   : > { %1734 = vmatmul.mubr.msk.f32.vlgmr.msra.gmra.mxu0 %vm345_vm2, %v985_v26 }
 0x842   : > { %v1730_v27 = vpop.f32.mrf.mxu1  ;;  %1743 = vmatprep.mubr.msk.f32.mxu0 %vm2035_vm1, %v2034_v8 }
 0x844   : > { %v1138_v28 = vpop.f32.mrf.mxu1 }
 0x845   : > { %v1142_v29 = vsel %vm340_vm3, %v1138_v28, -1e+30 }
 0x846   : > { %v1740_v32 = vpop.f32.mrf.mxu1  ;;  %v1143_v33 = vsel %vm345_vm2, %v1142_v29, -inf }
 0x847   : > { %1144 = vmax.xlane.f32.xlu1 %v1143_v33 }
 0x8d0   : > { %v1145_v34 = vpop.xlane.xlu1 %1144 }
 0x8d1   : > { %v1146_v35 = vsub.f32 %v1142_v29, %v1145_v34 }
 0x8d3   : > { %v1147_v36 = vmul.f32 1.442695, %v1146_v35 }
 0x8d5   : > { %1869 = vpow2.f32 %v1147_v36 }
 0x8e2   : > { %v1870_v37 = vpop.eup %1869 }
 0x8e3   : > { %v1149_v38 = vsel %vm345_vm2, %v1870_v37, 0.0 }
 0x8e4   : > { %1150 = vadd.xlane.f32.xlu0 %v1149_v38 }
 0x8fa   : > { %1154 = vrot.lane.b32.xlu0 %v2219_v23, %s2046_s21 }
 0x901   : > { %v1059_v30 = vpop.f32.mrf.mxu0 }
 0x902   : > { %v1063_v31 = vadd.f32 %v1059_v30, %v820_v6 }
 0x903   : > { %v1735_v40 = vpop.f32.mrf.mxu0 }
 0x96d   : > { %v1151_v41 = vpop.xlane.xlu0 %1150 }
 0x96e   : > { %1871 = vrcp.f32 %v1151_v41 }
 0x971   : > { %v1155_v42 = vpop.permute.xlu0 %1154 }
 0x972   : > { %1742 = vmatpush3.msra.mxu0 %v1155_v42 }
 0x973   : > { %1751 = vmatprep.subr.mxu0 %v2034_v8 }
 0x97b   : > { %v1872_v43 = vpop.eup %1871 }
 0x97c   : > { %v1153_v44 = vmul.f32 %v1872_v43, %v1870_v37 }
 0x97e   : > { %1744 = vmatmul.mubr.msk.f32.vlgmr.msra.gmra.mxu0 %vm345_vm2, %v1153_v44 }
 0x97f   : > { %1759 = vmatprep.mubr.msk.f32.mxu0 %vm2035_vm1, %v2034_v8  ;;  %1752 = vmatpush3.msra.mxu0 %v229_v58 }
 0x980   : > { %1753 = vmatprep.subr.mxu0 %v2034_v8 }
 0x981   : > { %1754 = vmatpush3.msra.mxu0 %v228_v59 }
 0x982   : > { %1755 = vmatprep.subr.mxu0 %v2034_v8 }
 0x983   : > { %1756 = vmatpush3.msra.mxu0 %v227_v60 }
 0x984   : > { %1757 = vmatprep.subr.mxu0 %v2034_v8 }
 0xa3e   : > { %v1226_v23 = vpop.f32.mrf.mxu0 }
 0xa3f   : > { %1749 = vmatmul.mubr.msk.f32.vlgmr.msra.gmra.mxu1 %vm345_vm2, %v1226_v23 }
 0xa40   : > { %v1745_v45 = vpop.f32.mrf.mxu0  ;;  %1770 = vmatprep.mubr.msk.f32.mxu1 %vm2035_vm1, %v2034_v8  ;;  %1763 = vmatpush3.xpose.msra.mxu1 %v233_v7 }
 0xa41   : > { %1764 = vmatprep.subr.mxu1 %v2034_v8 }
 0xa44   : > { %1765 = vmatpush3.xpose.msra.mxu1 %v232_v9 }
 0xa45   : > { %1766 = vmatprep.subr.mxu1 %v2034_v8 }
 0xa48   : > { %1767 = vmatpush3.xpose.msra.mxu1 %v231_v10 }
 0xa49   : > { %1768 = vmatprep.subr.mxu1 %v2034_v8  ;;  %v1636_v8 = vld [vmem:[#allocation7 + $0x5] ss:$0 sm:$0xff] }
 0xa4c   : > { %1769 = vmatpush3.xpose.msra.mxu1 %v230_v11 }
 0xaff   : > { %v1300_v46 = vpop.f32.mrf.mxu1 }
 0xb00   : > { %v1304_v47 = vadd.f32 %v1300_v46, %v1063_v31 }
 0xb01   : > { %v1750_v49 = vpop.f32.mrf.mxu1 }
 0xb02   : > { %v1305_v50 = vadd.f32 %v1304_v47, %v2200_v0  ;;  %v226_v0 = vld [vmem:[#allocation5 + $0x10] sm:$0xff] }
 0xb03   : > { %1758 = vmatpush3.msra.mxu0 %v226_v0 }
 0xb04   : > { %v1310_v51 = vadd.f32 %v1630_v48, %v1305_v50 }
 0xb06   : > { %v1311_v52 = vsel %vm234_vm0, %v1310_v51, 0.0 }
 0xb07   : > { %1312 = vadd.xlane.f32.xlu1 %v1311_v52 }
 0xb90   : > { %v1313_v53 = vpop.xlane.xlu1 %1312 }
 0xb91   : > { %v1314_v54 = vmul.f32 0.03125, %v1313_v53 }
 0xb93   : > { %v1315_v55 = vsub.f32 %v1310_v51, %v1314_v54 }
 0xb95   : > { %v1316_v56 = vmul.f32 %v1315_v55, %v1315_v55 }
 0xb97   : > { %v1317_v57 = vsel %vm234_vm0, %v1316_v56, 0.0 }
 0xb98   : > { %1318 = vadd.xlane.f32.xlu1 %v1317_v57 }
 0xc21   : > { %v1319_v61 = vpop.xlane.xlu1 %1318 }
 0xc22   : > { %v1320_v62 = vmul.f32 0.03125, %v1319_v61 }
 0xc24   : > { %v1321_v63 = vadd.f32 1e-05, %v1320_v62 }
 0xc26   : > { %1873 = vrsqrt.f32 %v1321_v63 }
 0xc33   : > { %v1874_v1 = vpop.eup %1873 }
 0xc34   : > { %v1323_v3 = vmul.f32 %v1874_v1, %v1315_v55 }
 0xc36   : > { %v1328_v5 = vmul.f32 %v1631_v2, %v1323_v3 }
 0xc38   : > { %v1333_v6 = vadd.f32 %v1632_v4, %v1328_v5 }
 0xc3a   : > { %1760 = vmatmul.mubr.msk.f32.vlgmr.msra.gmra.mxu0 %vm234_vm0, %v1333_v6 }
 0xcfa   : > { %v1407_v13 = vpop.f32.mrf.mxu0 }
 0xcfb   : > { %v1408_v14 = vadd.f32 %v1633_v12, %v1407_v13 }
 0xcfc   : > { %v1761_v15 = vpop.f32.mrf.mxu0 }
 0xcfd   : > { %v1635_v16 = vmul.f32 -1.702, %v1408_v14 }
 0xcff   : > { %v1413_v17 = vmul.f32 1.442695, %v1635_v16 }
 0xd01   : > { %1875 = vpow2.f32 %v1413_v17 }
 0xd0e   : > { %v1876_v18 = vpop.eup %1875 }
 0xd0f   : > { %v1415_v19 = vadd.f32 1.0, %v1876_v18 }
 0xd11   : > { %1877 = vrcp.f32 %v1415_v19 }
 0xd1e   : > { %v1878_v20 = vpop.eup %1877 }
 0xd1f   : > { %v1418_v21 = vmul.f32 %v1878_v20, %v1408_v14 }
 0xd21   : > { %1771 = vmatmul.mubr.f32.vlgmr.msra.gmra.mxu1 %v1418_v21 }
 0xde1   : > { %v1489_v22 = vpop.f32.mrf.mxu1 }
 0xde2   : > { %v1490_v24 = vadd.f32 %v1636_v8, %v1489_v22 }
 0xde3   : > { %v1772_v25 = vpop.f32.mrf.mxu1 }
 0xde4   : > { %v1493_v26 = vadd.f32 %v1490_v24, %v1310_v51 }
 0xde6   : > { %1494 = vst.msk [vmem:[%s212_s22] sm:$0xff] %vm234_vm0, %v1493_v26 }
 0xde7   : > { %1972 = shalt.err (!%p1969_p9)
}
 0xde8   : > { %s1973_s28 = scalar_lea.hbm %s1507_s18, 128  ;;  %s1977_s5 = scalar_lea.hbm %s2365_s3, 256 }
 0xde9   : > { %p1974_p13 = scmp.ne.s32.totalorder %s1507_s18, %s1973_s28  ;;  %p1978_p4 = scmp.lt.s32.totalorder %s1507_s18, %s2365_s3 }
 0xdea   : > { %p1979_p8 = scmp.lt.s32.totalorder %s1977_s5, %s1973_s28 }
 0xdeb   : > { %p1975_p5 = pnand %p1974_p13, %p2381_p0 }
 0xdec   : > { %p1980_p3 = por %p1979_p8, %p1978_p4 }
 0xded   : > { %p1976_p10 = pneg %p1975_p5 }
 0xdef   : > { %p1981_p11 = pnand %p1980_p3, %p1976_p10 }
 0xdf1   : > { %1984 = shalt.err (!%p1981_p11)
}
 0xdf2   : > { %1783 = dma.vmem_to_hbm [thread:$0]  (%p2381_p0), %s1510_s23, 128, %s1507_s18, %s1496_s20  }
 0xdf3 PF: > { %s1521_s9 = sand.u32 1, %s2015_s12   ;;  %p2382_p1 = scmp.ne.s32.totalorder %s2371_s19, 0 }
 0xdf4   : > { %p2383_p2 = scmp.ge.s32.totalorder %s2027_s15, 2  ;;  %s1522_s21 = scalar_lea.sflag [#allocation4], %s1521_s9 }
 0xdf6   : > { %p1797_p6 = pnand %p2383_p2, %p2382_p1 }
 0xdf8   : > { %p1798_p12 = pneg %p1797_p6 }
 0xdfa   : > { %2010 = dma.done.wait (%p1798_p12), %s1522_s21, 128  }
 0xdfb   : > { %2012 = vsyncadd (%p1798_p12), %s1522_s21, 4294967168  ;;  %p17_p7 = scmp.ge.s32.totalorder %s2140_s7, 4   ;;  %s2384_s12 = smov %s2019_s13 }
 0xdfc   : > { %s2385_s13 = smov %s2023_s14  ;;  %s2386_s14 = smov %s2156_s11 }
 0xdfd   : > { %s2387_s15 = smov %s2140_s7  ;;  %19 = sbr.rel (!%p17_p7) target bundleno = 6 (0x6), region = 85 }
 0xe02   :  { %1527 = vsyncpa [#allocation3], 1 }
 0xe03   :  { %1529 = vsyncpa [#allocation3 + $0x1], 1 }
 0xe04   :  { %1530 = vsyncpa [#allocation6], 1 }
 0xe05   :  { %1531 = vsyncpa [#allocation4], 1 }
 0xe06   :  { %1533 = vsyncpa [#allocation4 + $0x1], 1 }

</bundles_post_ra>
